<compile_context>
chip_gen: v7x
topology: tpu7x:2x2x1
jax: 0.10.0
libtpu: 0.0.40
codegen_flags: <defaults>
</compile_context>

<pallas_src>
import functools

import jax
import jax.numpy as jnp
from jax.experimental import pallas as pl
from jax.experimental.pallas import tpu as pltpu


# ----------------------------------------------------------------------------
# Fused kernel: one grid step == one batch element; everything stays in VMEM.
# ----------------------------------------------------------------------------
def _fused_attention_kernel(x_ref, mask_ref, wqkv_ref, wproj_ref, bproj_ref,
                            o_ref, *, num_heads, scale):
    N, C = x_ref.shape[1], x_ref.shape[2]
    D = C // num_heads

    # ---- QKV projection: bf16 operands on the MXU, f32 accumulation --------
    x = x_ref[0].astype(jnp.bfloat16)                            # (N, C)
    w_qkv = wqkv_ref[...].astype(jnp.bfloat16)                   # (C, 3C)
    qkv = jnp.dot(x, w_qkv, preferred_element_type=jnp.float32)  # (N, 3C) f32
    # The 3C axis is laid out [3, H, D] -> q | k | v, each a lane-dense (N, C) slab.
    # Fold the softmax scale into Q once (cheaper than scaling H (N,N) matrices).
    q = (qkv[:, 0:C] * scale).astype(jnp.bfloat16)               # (N, C) bf16
    k = qkv[:, C:2 * C].astype(jnp.bfloat16)                     # (N, C) bf16
    v = qkv[:, 2 * C:3 * C].astype(jnp.bfloat16)                 # (N, C) bf16

    add_mask = mask_ref[0]                                       # (1, N) f32 additive

    # ---- per-head attention: static unrolled loop over heads ---------------
    ctx_heads = []
    for h in range(num_heads):
        qh = q[:, h * D:(h + 1) * D]                             # (N, D) bf16
        kh = k[:, h * D:(h + 1) * D]                             # (N, D) bf16
        vh = v[:, h * D:(h + 1) * D]                             # (N, D) bf16
        # contract last dims of q and k directly (no explicit .T / XLU transpose)
        s = jax.lax.dot_general(
            qh, kh, (((1,), (1,)), ((), ())),
            preferred_element_type=jnp.float32)                  # (N, N) f32
        s = s + add_mask                                         # broadcast over queries
        m = jnp.max(s, axis=-1, keepdims=True)
        p = jnp.exp(s - m)                                       # f32 softmax path
        p = p * pl.reciprocal(jnp.sum(p, axis=-1, keepdims=True), approx=True)
        ctx_heads.append(
            jnp.dot(p.astype(jnp.bfloat16), vh,
                    preferred_element_type=jnp.float32))         # (N, D) f32
    ctx = jnp.concatenate(ctx_heads, axis=-1)                    # (N, C) lane-dense f32

    # ---- output projection + bias (single lane-dense (N, C) store) ---------
    out = jnp.dot(ctx.astype(jnp.bfloat16),
                  wproj_ref[...].astype(jnp.bfloat16),
                  preferred_element_type=jnp.float32) + bproj_ref[...]
    o_ref[0] = out


# ----------------------------------------------------------------------------
# Wrapper: one pallas_call for the whole forward pass
# ----------------------------------------------------------------------------
def attention_forward(x, pad_mask, params, num_heads):
    B, N, C = x.shape
    D = C // num_heads
    scale = D ** (-0.5)
    w_qkv, w_proj, b_proj = params

    # additive pad mask over keys: key 0 -> 0, keys 1..N-1 -> pad * -1e8
    if pad_mask is not None:
        add_mask = jnp.pad(pad_mask.astype(jnp.float32).reshape(B, N - 1),
                           ((0, 0), (1, 0))) * (-100000000.0)
    else:
        add_mask = jnp.zeros((B, N), jnp.float32)
    add_mask = add_mask.reshape(B, 1, N)

    kern = functools.partial(_fused_attention_kernel,
                             num_heads=num_heads, scale=scale)

    # TODO(synk): for realistic ViT sizes (N~200, C=768, large B) add a grid axis
    # tiling the query/sequence dimension with BlockSpec (flash-style online
    # softmax) and set pltpu.CompilerParams(vmem_limit_bytes=...) so the working
    # set fits v7x's 64 MiB VMEM; at these toy shapes the whole problem (<50 KiB)
    # comfortably lives in VMEM.
    return pl.pallas_call(
        kern,
        out_shape=jax.ShapeDtypeStruct((B, N, C), jnp.float32),
        grid=(B,),
        in_specs=[
            pl.BlockSpec((1, N, C), lambda b: (b, 0, 0)),        # x
            pl.BlockSpec((1, 1, N), lambda b: (b, 0, 0)),        # additive mask
            pl.BlockSpec((C, 3 * C), lambda b: (0, 0)),          # W_qkv (shared)
            pl.BlockSpec((C, C), lambda b: (0, 0)),              # W_proj (shared)
            pl.BlockSpec((1, C), lambda b: (0, 0)),              # b_proj (shared)
        ],
        out_specs=pl.BlockSpec((1, N, C), lambda b: (b, 0, 0)),
        compiler_params=pltpu.CompilerParams(
            dimension_semantics=("parallel",)),
    )(x, add_mask, w_qkv, w_proj, b_proj.reshape(1, C))


# ----------------------------------------------------------------------------
# Pure-JAX reference (mirrors the PyTorch forward) for correctness check
# ----------------------------------------------------------------------------
def attention_reference(x, pad_mask, params, num_heads):
    B, N, C = x.shape
    D = C // num_heads
    scale = D ** (-0.5)
    w_qkv, w_proj, b_proj = params
    qkv = (x @ w_qkv).reshape(B, N, 3, num_heads, D)             # qkv_bias=False
    qkv = jnp.transpose(qkv, (2, 0, 3, 1, 4))
    q, k, v = qkv[0], qkv[1], qkv[2]
    attn = jnp.einsum("bhqd,bhkd->bhqk", q, k) * scale
    if pad_mask is not None:
        attn = attn.at[..., :, 1:].add(
            pad_mask.reshape(B, 1, 1, -1).astype(jnp.float32) * (-100000000.0))
    attn = jax.nn.softmax(attn, axis=-1)
    out = jnp.einsum("bhqk,bhkd->bhqd", attn, v)
    out = jnp.transpose(out, (0, 2, 1, 3)).reshape(B, N, C)
    return out @ w_proj + b_proj


if __name__ == "__main__":
    B, N, C, H = 2, 8, 32, 8      # batch, seq, dim, num_heads  (head_dim = 4)

    key = jax.random.PRNGKey(0)
    kx, km, k1, k2, k3 = jax.random.split(key, 5)

    x = jax.random.normal(kx, (B, N, C), dtype=jnp.float32)
    # pad_mask over keys 1..N-1 (0 = keep, 1 = ignore)
    pad_mask = (jax.random.uniform(km, (B, N - 1)) > 0.7).astype(jnp.float32)

    # deterministic parameter init (qkv_bias=False -> no qkv bias at all)
    w_qkv = jax.random.normal(k1, (C, 3 * C), dtype=jnp.float32) * 0.05
    w_proj = jax.random.normal(k2, (C, C), dtype=jnp.float32) * 0.05
    b_proj = jax.random.normal(k3, (C,), dtype=jnp.float32) * 0.01
    params = (w_qkv, w_proj, b_proj)

    out = attention_forward(x, pad_mask, params, H)
    out = jax.block_until_ready(out)

    ref = attention_reference(x, pad_mask, params, H)
    assert out.shape == (B, N, C)
    # bf16 MXU operands + approx reciprocal -> compare at bf16-level tolerance
    # (softmax / accumulation stay in f32, so error is well inside this bound).
    assert jnp.allclose(out, ref, rtol=2e-2, atol=2e-2), (
        f"max err {jnp.max(jnp.abs(out - ref))}")

    print("KERNEL_OK")
</pallas_src>

<mosaic_0001>
module attributes {stable_mosaic.version = 11 : i64} {
  func.func @_fused_attention_kernel(%arg0: i32, %arg1: memref<1x8x32xf32, #tpu.memory_space<vmem>>, %arg2: memref<1x1x8xf32, #tpu.memory_space<vmem>>, %arg3: memref<32x96xf32, #tpu.memory_space<vmem>>, %arg4: memref<32x32xf32, #tpu.memory_space<vmem>>, %arg5: memref<1x32xf32, #tpu.memory_space<vmem>>, %arg6: memref<1x8x32xf32, #tpu.memory_space<vmem>>) attributes {dimension_semantics = [#tpu.dimension_semantics<parallel>], iteration_bounds = array<i64: 2>, scalar_prefetch = 0 : i64, scratch_operands = 0 : i64, tpu.core_type = #tpu.core_type<tc>, window_params = [{transform_indices = @transform_0, window_bounds = array<i64: 1, 8, 32>}, {transform_indices = @transform_1, window_bounds = array<i64: 1, 1, 8>}, {pipeline_mode = #tpu.pipeline_mode<synchronous>, transform_indices = @transform_2, window_bounds = array<i64: 32, 96>}, {pipeline_mode = #tpu.pipeline_mode<synchronous>, transform_indices = @transform_3, window_bounds = array<i64: 32, 32>}, {pipeline_mode = #tpu.pipeline_mode<synchronous>, transform_indices = @transform_4, window_bounds = array<i64: 1, 32>}, {transform_indices = @transform_5, window_bounds = array<i64: 1, 8, 32>}]} {
    %c0 = arith.constant 0 : index
    %c0_0 = arith.constant 0 : index
    %c0_1 = arith.constant 0 : index
    %0 = vector.load %arg1[%c0, %c0_0, %c0_1] : memref<1x8x32xf32, #tpu.memory_space<vmem>>, vector<1x8x32xf32>
    %1 = vector.shape_cast %0 : vector<1x8x32xf32> to vector<8x32xf32>
    %2 = arith.truncf %1 : vector<8x32xf32> to vector<8x32xbf16>
    %c0_2 = arith.constant 0 : index
    %c0_3 = arith.constant 0 : index
    %3 = vector.load %arg3[%c0_2, %c0_3] : memref<32x96xf32, #tpu.memory_space<vmem>>, vector<32x96xf32>
    %4 = arith.truncf %3 : vector<32x96xf32> to vector<32x96xbf16>
    %cst = arith.constant dense<0.000000e+00> : vector<8x96xf32>
    %5 = tpu.matmul %2, %4, %cst {dimension_numbers = #tpu.dot_dimension_numbers<[1], [0], [0], [1], [0, 0, 1, 1], [], []>} : vector<8x32xbf16>, vector<32x96xbf16>, vector<8x96xf32> -> vector<8x96xf32>
    %6 = vector.extract_strided_slice %5 {offsets = [0, 0], sizes = [8, 32], strides = [1, 1]} : vector<8x96xf32> to vector<8x32xf32>
    %cst_4 = arith.constant 5.000000e-01 : f32
    %7 = vector.broadcast %cst_4 : f32 to vector<8x32xf32>
    %8 = arith.mulf %6, %7 : vector<8x32xf32>
    %9 = arith.truncf %8 : vector<8x32xf32> to vector<8x32xbf16>
    %10 = vector.extract_strided_slice %5 {offsets = [0, 32], sizes = [8, 32], strides = [1, 1]} : vector<8x96xf32> to vector<8x32xf32>
    %11 = arith.truncf %10 : vector<8x32xf32> to vector<8x32xbf16>
    %12 = vector.extract_strided_slice %5 {offsets = [0, 64], sizes = [8, 32], strides = [1, 1]} : vector<8x96xf32> to vector<8x32xf32>
    %13 = arith.truncf %12 : vector<8x32xf32> to vector<8x32xbf16>
    %c0_5 = arith.constant 0 : index
    %c0_6 = arith.constant 0 : index
    %c0_7 = arith.constant 0 : index
    %14 = vector.load %arg2[%c0_5, %c0_6, %c0_7] : memref<1x1x8xf32, #tpu.memory_space<vmem>>, vector<1x1x8xf32>
    %15 = vector.shape_cast %14 : vector<1x1x8xf32> to vector<1x8xf32>
    %16 = vector.extract_strided_slice %9 {offsets = [0, 0], sizes = [8, 4], strides = [1, 1]} : vector<8x32xbf16> to vector<8x4xbf16>
    %17 = vector.extract_strided_slice %11 {offsets = [0, 0], sizes = [8, 4], strides = [1, 1]} : vector<8x32xbf16> to vector<8x4xbf16>
    %18 = vector.extract_strided_slice %13 {offsets = [0, 0], sizes = [8, 4], strides = [1, 1]} : vector<8x32xbf16> to vector<8x4xbf16>
    %cst_8 = arith.constant dense<0.000000e+00> : vector<8x8xf32>
    %19 = tpu.matmul %16, %17, %cst_8 {dimension_numbers = #tpu.dot_dimension_numbers<[1], [1], [0], [0], [0, 0, 1, 0], [], []>} : vector<8x4xbf16>, vector<8x4xbf16>, vector<8x8xf32> -> vector<8x8xf32>
    %20 = vector.broadcast %15 : vector<1x8xf32> to vector<8x8xf32>
    %21 = arith.addf %19, %20 : vector<8x8xf32>
    %cst_9 = arith.constant dense<0xFF800000> : vector<8xf32>
    %22 = vector.multi_reduction <maximumf>, %21, %cst_9 [1] : vector<8x8xf32> to vector<8xf32>
    %23 = vector.shape_cast %22 : vector<8xf32> to vector<8x1xf32>
    %24 = vector.broadcast %23 : vector<8x1xf32> to vector<8x8xf32>
    %25 = arith.subf %21, %24 : vector<8x8xf32>
    %26 = math.exp %25 : vector<8x8xf32>
    %cst_10 = arith.constant dense<0.000000e+00> : vector<8xf32>
    %27 = vector.multi_reduction <add>, %26, %cst_10 [1] : vector<8x8xf32> to vector<8xf32>
    %28 = vector.shape_cast %27 : vector<8xf32> to vector<8x1xf32>
    %29 = tpu.reciprocal %28 {approx = true} : vector<8x1xf32> -> vector<8x1xf32>
    %30 = vector.broadcast %29 : vector<8x1xf32> to vector<8x8xf32>
    %31 = arith.mulf %26, %30 : vector<8x8xf32>
    %32 = arith.truncf %31 : vector<8x8xf32> to vector<8x8xbf16>
    %cst_11 = arith.constant dense<0.000000e+00> : vector<8x4xf32>
    %33 = tpu.matmul %32, %18, %cst_11 {dimension_numbers = #tpu.dot_dimension_numbers<[1], [0], [0], [1], [0, 0, 1, 1], [], []>} : vector<8x8xbf16>, vector<8x4xbf16>, vector<8x4xf32> -> vector<8x4xf32>
    %34 = vector.extract_strided_slice %9 {offsets = [0, 4], sizes = [8, 4], strides = [1, 1]} : vector<8x32xbf16> to vector<8x4xbf16>
    %35 = vector.extract_strided_slice %11 {offsets = [0, 4], sizes = [8, 4], strides = [1, 1]} : vector<8x32xbf16> to vector<8x4xbf16>
    %36 = vector.extract_strided_slice %13 {offsets = [0, 4], sizes = [8, 4], strides = [1, 1]} : vector<8x32xbf16> to vector<8x4xbf16>
    %cst_12 = arith.constant dense<0.000000e+00> : vector<8x8xf32>
    %37 = tpu.matmul %34, %35, %cst_12 {dimension_numbers = #tpu.dot_dimension_numbers<[1], [1], [0], [0], [0, 0, 1, 0], [], []>} : vector<8x4xbf16>, vector<8x4xbf16>, vector<8x8xf32> -> vector<8x8xf32>
    %38 = vector.broadcast %15 : vector<1x8xf32> to vector<8x8xf32>
    %39 = arith.addf %37, %38 : vector<8x8xf32>
    %cst_13 = arith.constant dense<0xFF800000> : vector<8xf32>
    %40 = vector.multi_reduction <maximumf>, %39, %cst_13 [1] : vector<8x8xf32> to vector<8xf32>
    %41 = vector.shape_cast %40 : vector<8xf32> to vector<8x1xf32>
    %42 = vector.broadcast %41 : vector<8x1xf32> to vector<8x8xf32>
    %43 = arith.subf %39, %42 : vector<8x8xf32>
    %44 = math.exp %43 : vector<8x8xf32>
    %cst_14 = arith.constant dense<0.000000e+00> : vector<8xf32>
    %45 = vector.multi_reduction <add>, %44, %cst_14 [1] : vector<8x8xf32> to vector<8xf32>
    %46 = vector.shape_cast %45 : vector<8xf32> to vector<8x1xf32>
    %47 = tpu.reciprocal %46 {approx = true} : vector<8x1xf32> -> vector<8x1xf32>
    %48 = vector.broadcast %47 : vector<8x1xf32> to vector<8x8xf32>
    %49 = arith.mulf %44, %48 : vector<8x8xf32>
    %50 = arith.truncf %49 : vector<8x8xf32> to vector<8x8xbf16>
    %cst_15 = arith.constant dense<0.000000e+00> : vector<8x4xf32>
    %51 = tpu.matmul %50, %36, %cst_15 {dimension_numbers = #tpu.dot_dimension_numbers<[1], [0], [0], [1], [0, 0, 1, 1], [], []>} : vector<8x8xbf16>, vector<8x4xbf16>, vector<8x4xf32> -> vector<8x4xf32>
    %52 = vector.extract_strided_slice %9 {offsets = [0, 8], sizes = [8, 4], strides = [1, 1]} : vector<8x32xbf16> to vector<8x4xbf16>
    %53 = vector.extract_strided_slice %11 {offsets = [0, 8], sizes = [8, 4], strides = [1, 1]} : vector<8x32xbf16> to vector<8x4xbf16>
    %54 = vector.extract_strided_slice %13 {offsets = [0, 8], sizes = [8, 4], strides = [1, 1]} : vector<8x32xbf16> to vector<8x4xbf16>
    %cst_16 = arith.constant dense<0.000000e+00> : vector<8x8xf32>
    %55 = tpu.matmul %52, %53, %cst_16 {dimension_numbers = #tpu.dot_dimension_numbers<[1], [1], [0], [0], [0, 0, 1, 0], [], []>} : vector<8x4xbf16>, vector<8x4xbf16>, vector<8x8xf32> -> vector<8x8xf32>
    %56 = vector.broadcast %15 : vector<1x8xf32> to vector<8x8xf32>
    %57 = arith.addf %55, %56 : vector<8x8xf32>
    %cst_17 = arith.constant dense<0xFF800000> : vector<8xf32>
    %58 = vector.multi_reduction <maximumf>, %57, %cst_17 [1] : vector<8x8xf32> to vector<8xf32>
    %59 = vector.shape_cast %58 : vector<8xf32> to vector<8x1xf32>
    %60 = vector.broadcast %59 : vector<8x1xf32> to vector<8x8xf32>
    %61 = arith.subf %57, %60 : vector<8x8xf32>
    %62 = math.exp %61 : vector<8x8xf32>
    %cst_18 = arith.constant dense<0.000000e+00> : vector<8xf32>
    %63 = vector.multi_reduction <add>, %62, %cst_18 [1] : vector<8x8xf32> to vector<8xf32>
    %64 = vector.shape_cast %63 : vector<8xf32> to vector<8x1xf32>
    %65 = tpu.reciprocal %64 {approx = true} : vector<8x1xf32> -> vector<8x1xf32>
    %66 = vector.broadcast %65 : vector<8x1xf32> to vector<8x8xf32>
    %67 = arith.mulf %62, %66 : vector<8x8xf32>
    %68 = arith.truncf %67 : vector<8x8xf32> to vector<8x8xbf16>
    %cst_19 = arith.constant dense<0.000000e+00> : vector<8x4xf32>
    %69 = tpu.matmul %68, %54, %cst_19 {dimension_numbers = #tpu.dot_dimension_numbers<[1], [0], [0], [1], [0, 0, 1, 1], [], []>} : vector<8x8xbf16>, vector<8x4xbf16>, vector<8x4xf32> -> vector<8x4xf32>
    %70 = vector.extract_strided_slice %9 {offsets = [0, 12], sizes = [8, 4], strides = [1, 1]} : vector<8x32xbf16> to vector<8x4xbf16>
    %71 = vector.extract_strided_slice %11 {offsets = [0, 12], sizes = [8, 4], strides = [1, 1]} : vector<8x32xbf16> to vector<8x4xbf16>
    %72 = vector.extract_strided_slice %13 {offsets = [0, 12], sizes = [8, 4], strides = [1, 1]} : vector<8x32xbf16> to vector<8x4xbf16>
    %cst_20 = arith.constant dense<0.000000e+00> : vector<8x8xf32>
    %73 = tpu.matmul %70, %71, %cst_20 {dimension_numbers = #tpu.dot_dimension_numbers<[1], [1], [0], [0], [0, 0, 1, 0], [], []>} : vector<8x4xbf16>, vector<8x4xbf16>, vector<8x8xf32> -> vector<8x8xf32>
    %74 = vector.broadcast %15 : vector<1x8xf32> to vector<8x8xf32>
    %75 = arith.addf %73, %74 : vector<8x8xf32>
    %cst_21 = arith.constant dense<0xFF800000> : vector<8xf32>
    %76 = vector.multi_reduction <maximumf>, %75, %cst_21 [1] : vector<8x8xf32> to vector<8xf32>
    %77 = vector.shape_cast %76 : vector<8xf32> to vector<8x1xf32>
    %78 = vector.broadcast %77 : vector<8x1xf32> to vector<8x8xf32>
    %79 = arith.subf %75, %78 : vector<8x8xf32>
    %80 = math.exp %79 : vector<8x8xf32>
    %cst_22 = arith.constant dense<0.000000e+00> : vector<8xf32>
    %81 = vector.multi_reduction <add>, %80, %cst_22 [1] : vector<8x8xf32> to vector<8xf32>
    %82 = vector.shape_cast %81 : vector<8xf32> to vector<8x1xf32>
    %83 = tpu.reciprocal %82 {approx = true} : vector<8x1xf32> -> vector<8x1xf32>
    %84 = vector.broadcast %83 : vector<8x1xf32> to vector<8x8xf32>
    %85 = arith.mulf %80, %84 : vector<8x8xf32>
    %86 = arith.truncf %85 : vector<8x8xf32> to vector<8x8xbf16>
    %cst_23 = arith.constant dense<0.000000e+00> : vector<8x4xf32>
    %87 = tpu.matmul %86, %72, %cst_23 {dimension_numbers = #tpu.dot_dimension_numbers<[1], [0], [0], [1], [0, 0, 1, 1], [], []>} : vector<8x8xbf16>, vector<8x4xbf16>, vector<8x4xf32> -> vector<8x4xf32>
    %88 = vector.extract_strided_slice %9 {offsets = [0, 16], sizes = [8, 4], strides = [1, 1]} : vector<8x32xbf16> to vector<8x4xbf16>
    %89 = vector.extract_strided_slice %11 {offsets = [0, 16], sizes = [8, 4], strides = [1, 1]} : vector<8x32xbf16> to vector<8x4xbf16>
    %90 = vector.extract_strided_slice %13 {offsets = [0, 16], sizes = [8, 4], strides = [1, 1]} : vector<8x32xbf16> to vector<8x4xbf16>
    %cst_24 = arith.constant dense<0.000000e+00> : vector<8x8xf32>
    %91 = tpu.matmul %88, %89, %cst_24 {dimension_numbers = #tpu.dot_dimension_numbers<[1], [1], [0], [0], [0, 0, 1, 0], [], []>} : vector<8x4xbf16>, vector<8x4xbf16>, vector<8x8xf32> -> vector<8x8xf32>
    %92 = vector.broadcast %15 : vector<1x8xf32> to vector<8x8xf32>
    %93 = arith.addf %91, %92 : vector<8x8xf32>
    %cst_25 = arith.constant dense<0xFF800000> : vector<8xf32>
    %94 = vector.multi_reduction <maximumf>, %93, %cst_25 [1] : vector<8x8xf32> to vector<8xf32>
    %95 = vector.shape_cast %94 : vector<8xf32> to vector<8x1xf32>
    %96 = vector.broadcast %95 : vector<8x1xf32> to vector<8x8xf32>
    %97 = arith.subf %93, %96 : vector<8x8xf32>
    %98 = math.exp %97 : vector<8x8xf32>
    %cst_26 = arith.constant dense<0.000000e+00> : vector<8xf32>
    %99 = vector.multi_reduction <add>, %98, %cst_26 [1] : vector<8x8xf32> to vector<8xf32>
    %100 = vector.shape_cast %99 : vector<8xf32> to vector<8x1xf32>
    %101 = tpu.reciprocal %100 {approx = true} : vector<8x1xf32> -> vector<8x1xf32>
    %102 = vector.broadcast %101 : vector<8x1xf32> to vector<8x8xf32>
    %103 = arith.mulf %98, %102 : vector<8x8xf32>
    %104 = arith.truncf %103 : vector<8x8xf32> to vector<8x8xbf16>
    %cst_27 = arith.constant dense<0.000000e+00> : vector<8x4xf32>
    %105 = tpu.matmul %104, %90, %cst_27 {dimension_numbers = #tpu.dot_dimension_numbers<[1], [0], [0], [1], [0, 0, 1, 1], [], []>} : vector<8x8xbf16>, vector<8x4xbf16>, vector<8x4xf32> -> vector<8x4xf32>
    %106 = vector.extract_strided_slice %9 {offsets = [0, 20], sizes = [8, 4], strides = [1, 1]} : vector<8x32xbf16> to vector<8x4xbf16>
    %107 = vector.extract_strided_slice %11 {offsets = [0, 20], sizes = [8, 4], strides = [1, 1]} : vector<8x32xbf16> to vector<8x4xbf16>
    %108 = vector.extract_strided_slice %13 {offsets = [0, 20], sizes = [8, 4], strides = [1, 1]} : vector<8x32xbf16> to vector<8x4xbf16>
    %cst_28 = arith.constant dense<0.000000e+00> : vector<8x8xf32>
    %109 = tpu.matmul %106, %107, %cst_28 {dimension_numbers = #tpu.dot_dimension_numbers<[1], [1], [0], [0], [0, 0, 1, 0], [], []>} : vector<8x4xbf16>, vector<8x4xbf16>, vector<8x8xf32> -> vector<8x8xf32>
    %110 = vector.broadcast %15 : vector<1x8xf32> to vector<8x8xf32>
    %111 = arith.addf %109, %110 : vector<8x8xf32>
    %cst_29 = arith.constant dense<0xFF800000> : vector<8xf32>
    %112 = vector.multi_reduction <maximumf>, %111, %cst_29 [1] : vector<8x8xf32> to vector<8xf32>
    %113 = vector.shape_cast %112 : vector<8xf32> to vector<8x1xf32>
    %114 = vector.broadcast %113 : vector<8x1xf32> to vector<8x8xf32>
    %115 = arith.subf %111, %114 : vector<8x8xf32>
    %116 = math.exp %115 : vector<8x8xf32>
    %cst_30 = arith.constant dense<0.000000e+00> : vector<8xf32>
    %117 = vector.multi_reduction <add>, %116, %cst_30 [1] : vector<8x8xf32> to vector<8xf32>
    %118 = vector.shape_cast %117 : vector<8xf32> to vector<8x1xf32>
    %119 = tpu.reciprocal %118 {approx = true} : vector<8x1xf32> -> vector<8x1xf32>
    %120 = vector.broadcast %119 : vector<8x1xf32> to vector<8x8xf32>
    %121 = arith.mulf %116, %120 : vector<8x8xf32>
    %122 = arith.truncf %121 : vector<8x8xf32> to vector<8x8xbf16>
    %cst_31 = arith.constant dense<0.000000e+00> : vector<8x4xf32>
    %123 = tpu.matmul %122, %108, %cst_31 {dimension_numbers = #tpu.dot_dimension_numbers<[1], [0], [0], [1], [0, 0, 1, 1], [], []>} : vector<8x8xbf16>, vector<8x4xbf16>, vector<8x4xf32> -> vector<8x4xf32>
    %124 = vector.extract_strided_slice %9 {offsets = [0, 24], sizes = [8, 4], strides = [1, 1]} : vector<8x32xbf16> to vector<8x4xbf16>
    %125 = vector.extract_strided_slice %11 {offsets = [0, 24], sizes = [8, 4], strides = [1, 1]} : vector<8x32xbf16> to vector<8x4xbf16>
    %126 = vector.extract_strided_slice %13 {offsets = [0, 24], sizes = [8, 4], strides = [1, 1]} : vector<8x32xbf16> to vector<8x4xbf16>
    %cst_32 = arith.constant dense<0.000000e+00> : vector<8x8xf32>
    %127 = tpu.matmul %124, %125, %cst_32 {dimension_numbers = #tpu.dot_dimension_numbers<[1], [1], [0], [0], [0, 0, 1, 0], [], []>} : vector<8x4xbf16>, vector<8x4xbf16>, vector<8x8xf32> -> vector<8x8xf32>
    %128 = vector.broadcast %15 : vector<1x8xf32> to vector<8x8xf32>
    %129 = arith.addf %127, %128 : vector<8x8xf32>
    %cst_33 = arith.constant dense<0xFF800000> : vector<8xf32>
    %130 = vector.multi_reduction <maximumf>, %129, %cst_33 [1] : vector<8x8xf32> to vector<8xf32>
    %131 = vector.shape_cast %130 : vector<8xf32> to vector<8x1xf32>
    %132 = vector.broadcast %131 : vector<8x1xf32> to vector<8x8xf32>
    %133 = arith.subf %129, %132 : vector<8x8xf32>
    %134 = math.exp %133 : vector<8x8xf32>
    %cst_34 = arith.constant dense<0.000000e+00> : vector<8xf32>
    %135 = vector.multi_reduction <add>, %134, %cst_34 [1] : vector<8x8xf32> to vector<8xf32>
    %136 = vector.shape_cast %135 : vector<8xf32> to vector<8x1xf32>
    %137 = tpu.reciprocal %136 {approx = true} : vector<8x1xf32> -> vector<8x1xf32>
    %138 = vector.broadcast %137 : vector<8x1xf32> to vector<8x8xf32>
    %139 = arith.mulf %134, %138 : vector<8x8xf32>
    %140 = arith.truncf %139 : vector<8x8xf32> to vector<8x8xbf16>
    %cst_35 = arith.constant dense<0.000000e+00> : vector<8x4xf32>
    %141 = tpu.matmul %140, %126, %cst_35 {dimension_numbers = #tpu.dot_dimension_numbers<[1], [0], [0], [1], [0, 0, 1, 1], [], []>} : vector<8x8xbf16>, vector<8x4xbf16>, vector<8x4xf32> -> vector<8x4xf32>
    %142 = vector.extract_strided_slice %9 {offsets = [0, 28], sizes = [8, 4], strides = [1, 1]} : vector<8x32xbf16> to vector<8x4xbf16>
    %143 = vector.extract_strided_slice %11 {offsets = [0, 28], sizes = [8, 4], strides = [1, 1]} : vector<8x32xbf16> to vector<8x4xbf16>
    %144 = vector.extract_strided_slice %13 {offsets = [0, 28], sizes = [8, 4], strides = [1, 1]} : vector<8x32xbf16> to vector<8x4xbf16>
    %cst_36 = arith.constant dense<0.000000e+00> : vector<8x8xf32>
    %145 = tpu.matmul %142, %143, %cst_36 {dimension_numbers = #tpu.dot_dimension_numbers<[1], [1], [0], [0], [0, 0, 1, 0], [], []>} : vector<8x4xbf16>, vector<8x4xbf16>, vector<8x8xf32> -> vector<8x8xf32>
    %146 = vector.broadcast %15 : vector<1x8xf32> to vector<8x8xf32>
    %147 = arith.addf %145, %146 : vector<8x8xf32>
    %cst_37 = arith.constant dense<0xFF800000> : vector<8xf32>
    %148 = vector.multi_reduction <maximumf>, %147, %cst_37 [1] : vector<8x8xf32> to vector<8xf32>
    %149 = vector.shape_cast %148 : vector<8xf32> to vector<8x1xf32>
    %150 = vector.broadcast %149 : vector<8x1xf32> to vector<8x8xf32>
    %151 = arith.subf %147, %150 : vector<8x8xf32>
    %152 = math.exp %151 : vector<8x8xf32>
    %cst_38 = arith.constant dense<0.000000e+00> : vector<8xf32>
    %153 = vector.multi_reduction <add>, %152, %cst_38 [1] : vector<8x8xf32> to vector<8xf32>
    %154 = vector.shape_cast %153 : vector<8xf32> to vector<8x1xf32>
    %155 = tpu.reciprocal %154 {approx = true} : vector<8x1xf32> -> vector<8x1xf32>
    %156 = vector.broadcast %155 : vector<8x1xf32> to vector<8x8xf32>
    %157 = arith.mulf %152, %156 : vector<8x8xf32>
    %158 = arith.truncf %157 : vector<8x8xf32> to vector<8x8xbf16>
    %cst_39 = arith.constant dense<0.000000e+00> : vector<8x4xf32>
    %159 = tpu.matmul %158, %144, %cst_39 {dimension_numbers = #tpu.dot_dimension_numbers<[1], [0], [0], [1], [0, 0, 1, 1], [], []>} : vector<8x8xbf16>, vector<8x4xbf16>, vector<8x4xf32> -> vector<8x4xf32>
    %160 = tpu.concatenate %33, %51, %69, %87, %105, %123, %141, %159 in 1 : vector<8x4xf32>, vector<8x4xf32>, vector<8x4xf32>, vector<8x4xf32>, vector<8x4xf32>, vector<8x4xf32>, vector<8x4xf32>, vector<8x4xf32> -> vector<8x32xf32>
    %161 = arith.truncf %160 : vector<8x32xf32> to vector<8x32xbf16>
    %c0_40 = arith.constant 0 : index
    %c0_41 = arith.constant 0 : index
    %162 = vector.load %arg4[%c0_40, %c0_41] : memref<32x32xf32, #tpu.memory_space<vmem>>, vector<32x32xf32>
    %163 = arith.truncf %162 : vector<32x32xf32> to vector<32x32xbf16>
    %cst_42 = arith.constant dense<0.000000e+00> : vector<8x32xf32>
    %164 = tpu.matmul %161, %163, %cst_42 {dimension_numbers = #tpu.dot_dimension_numbers<[1], [0], [0], [1], [0, 0, 1, 1], [], []>} : vector<8x32xbf16>, vector<32x32xbf16>, vector<8x32xf32> -> vector<8x32xf32>
    %c0_43 = arith.constant 0 : index
    %c0_44 = arith.constant 0 : index
    %165 = vector.load %arg5[%c0_43, %c0_44] : memref<1x32xf32, #tpu.memory_space<vmem>>, vector<1x32xf32>
    %166 = vector.broadcast %165 : vector<1x32xf32> to vector<8x32xf32>
    %167 = arith.addf %164, %166 : vector<8x32xf32>
    %c0_45 = arith.constant 0 : index
    %c0_46 = arith.constant 0 : index
    %c0_47 = arith.constant 0 : index
    %168 = vector.load %arg6[%c0_45, %c0_46, %c0_47] : memref<1x8x32xf32, #tpu.memory_space<vmem>>, vector<1x8x32xf32>
    %169 = vector.shape_cast %168 : vector<1x8x32xf32> to vector<8x32xf32>
    %170 = vector.shape_cast %167 : vector<8x32xf32> to vector<1x8x32xf32>
    tpu.vector_store %arg6[%c0_45, %c0_46, %c0_47], %170 {strides = array<i32>} : memref<1x8x32xf32, #tpu.memory_space<vmem>>, vector<1x8x32xf32>,
    return
  }
  func.func @transform_0(%arg0: i32) -> (i32, i32, i32) {
    %c0_i32 = arith.constant 0 : i32
    %c0_i32_0 = arith.constant 0 : i32
    %c0_i32_1 = arith.constant 0 : i32
    return %arg0, %c0_i32, %c0_i32_0 : i32, i32, i32
  }
  func.func @transform_1(%arg0: i32) -> (i32, i32, i32) {
    %c0_i32 = arith.constant 0 : i32
    %c0_i32_0 = arith.constant 0 : i32
    %c0_i32_1 = arith.constant 0 : i32
    return %arg0, %c0_i32, %c0_i32_0 : i32, i32, i32
  }
  func.func @transform_2(%arg0: i32) -> (i32, i32) {
    %c0_i32 = arith.constant 0 : i32
    %c0_i32_0 = arith.constant 0 : i32
    %c0_i32_1 = arith.constant 0 : i32
    return %c0_i32, %c0_i32_0 : i32, i32
  }
  func.func @transform_3(%arg0: i32) -> (i32, i32) {
    %c0_i32 = arith.constant 0 : i32
    %c0_i32_0 = arith.constant 0 : i32
    %c0_i32_1 = arith.constant 0 : i32
    return %c0_i32, %c0_i32_0 : i32, i32
  }
  func.func @transform_4(%arg0: i32) -> (i32, i32) {
    %c0_i32 = arith.constant 0 : i32
    %c0_i32_0 = arith.constant 0 : i32
    %c0_i32_1 = arith.constant 0 : i32
    return %c0_i32, %c0_i32_0 : i32, i32
  }
  func.func @transform_5(%arg0: i32) -> (i32, i32, i32) {
    %c0_i32 = arith.constant 0 : i32
    %c0_i32_0 = arith.constant 0 : i32
    %c0_i32_1 = arith.constant 0 : i32
    return %arg0, %c0_i32, %c0_i32_0 : i32, i32, i32
  }
}

</mosaic_0001>

<bundles_post_ra>
// kernel: tpu_custom_call.1
= control target key start
LH: loop header
LB: loop body
LE: loop exit
PB: predicated region body
PF: predicated region fallthrough
CT: control target
= control target key end

     0   :  { %10 = vsyncpa [#allocation3], 0  ;;  %s2396_s0 = inlined_call_operand.hbm [shape: f32[2,8,32], index: 0, kind: input, shape index: {}]   ;;  %s2397_s1 = inlined_call_operand.vmem [shape: f32[2,1,8], index: 1, kind: input, shape index: {}]   ;;  %s2398_s2 = inlined_call_operand.hbm [shape: f32[32,96], index: 2, kind: input, shape index: {}]   ;;  %s2399_s3 = inlined_call_operand.hbm [shape: f32[32,32], index: 3, kind: input, shape index: {}]   ;;  %s2400_s4 = inlined_call_operand.vmem [shape: f32[1,32], index: 4, kind: input, shape index: {}]   ;;  %s2401_s5 = inlined_call_operand.hbm [shape: f32[2,8,32], index: 5, kind: output, shape index: {}]  }
   0x1   :  { %12 = vsyncpa [#allocation3 + $0x1], 0 }
   0x2   :  { %13 = vsyncpa [#allocation6], 0 }
   0x3   :  { %14 = vsyncpa [#allocation4], 0 }
   0x4   :  { %16 = vsyncpa [#allocation4 + $0x1], 0  ;;  %s1984_s18 = smov 0   ;;  %s1986_s19 = smov 0  }
   0x5   :  { %s1988_s20 = smov 0   ;;  %s1990_s21 = smov 0  }
   0x6 LB: > { %s2005_s22 = sadd.s32 4294967295, %s1914_s21   ;;  %s1439_s23 = sadd.s32 4294967294, %s1914_s21   ;;  %s1914_s21 = sphi %s1990_s21, %s2421_s21   ;;  %s1910_s20 = sphi %s1988_s20, %s2420_s20   ;;  %s1906_s19 = sphi %s1986_s19, %s2419_s19   ;;  %s1902_s18 = sphi %s1984_s18, %s2418_s18  }
   0x7   : > { %p42_p0 = scmp.ne.s32.totalorder %s1906_s19, %s1902_s18  ;;  %p2402_p1 = scmp.eq.s32.totalorder %s2005_s22, 0 }
   0x8   : > { %p161_p3 = scmp.eq.s32.totalorder %s1439_s23, 1  ;;  %p1440_p5 = scmp.ge.s32.totalorder %s1914_s21, 1 }
   0x9   : > { %p2014_p4 = por %p2402_p1, %p42_p0  ;;  %p168_p7 = scmp.lt.s32.totalorder %s1914_s21, 3 }
   0xa   : > { %p2019_p6 = por %p161_p3, %p42_p0  ;;  %s1916_s27 = smov [#allocation5]  }
   0xb   : > { %s2405_s24 = scalar_select %p2014_p4, 1, 0 }
   0xc   : > { %s2406_s25 = scalar_select %p2019_p6, 1, 0 }
   0xd   : > { %p2024_p8 = pnand %p1440_p5, %p168_p7  ;;  %s180_s28 = sshll.u32 %s1916_s27, 4  ;;  %s2028_s28 = int_to_ptr.vmem [resolvable:$true] %s180_s28 }
   0xe   : > { %s1917_s30 = smov [#allocation7]   ;;  %s1758_s9 = scalar_lea.hbm %s2398_s2, 512 }
   0xf   : > { %p1637_p9 = pneg %p2024_p8  ;;  %s193_s6 = sshll.u32 %s1917_s30, 4  ;;  %s2039_s6 = int_to_ptr.vmem [resolvable:$true] %s193_s6 }
  0x10   : > { %p1759_p12 = scmp.ne.s32.totalorder %s2398_s2, %s1758_s9  ;;  %p1765_p5 = scmp.lt.u32.totalorder %s1758_s9, %s2398_s2 }
  0x11   : > { %p2035_p11 = pnand %p1637_p9, %p2402_p1 }
  0x13   : > { %p1760_p13 = pneg %p2035_p11 }
  0x15   : > { %p1761_p0 = pnand %p1760_p13, %p1759_p12 }
  0x17   : > { %p1762_p3 = pneg %p1761_p0 }
  0x19   : > { %p1767_p7 = pnand %p1765_p5, %p1762_p3 }
  0x1b   : > { %1770 = shalt.err (!%p1767_p7)
}
  0x1c   : > { %s1771_s14 = scalar_lea.vmem %s2028_s28, 512  ;;  %p1779_p2 = scmp.lt.s32.totalorder %s2028_s28, %s2028_s28 }
  0x1d   : > { %p1772_p9 = scmp.ne.s32.totalorder %s2028_s28, %s1771_s14  ;;  %p1780_p12 = scmp.lt.s32.totalorder %s1771_s14, %s1771_s14 }
  0x1f   : > { %p1774_p10 = pnand %p1772_p9, %p1760_p13  ;;  %p1781_p0 = por %p1780_p12, %p1779_p2 }
  0x21   : > { %p1775_p1 = pneg %p1774_p10 }
  0x23   : > { %p1782_p6 = pnand %p1781_p0, %p1775_p1 }
  0x25   : > { %1785 = shalt.err (!%p1782_p6)
}
  0x26   : > { %s1918_s15 = smov 128   ;;  %s1919_s16 = smov 8  }
  0x27   : > { %1640 = dma.hbm_to_vmem [thread:$0]  (!%p2035_p11), %s2398_s2, 512, %s2028_s28, [#allocation6], %s1918_s15, %s1918_s15, %s1919_s16  }
  0x28   : > { %s1786_s7 = scalar_lea.hbm %s2399_s3, 512 }
  0x29   : > { %p1787_p2 = scmp.ne.s32.totalorder %s2399_s3, %s1786_s7  ;;  %p1793_p10 = scmp.lt.u32.totalorder %s1786_s7, %s2399_s3 }
  0x2b   : > { %p1789_p1 = pnand %p1787_p2, %p1760_p13 }
  0x2d   : > { %p1790_p6 = pneg %p1789_p1 }
  0x2f   : > { %p1795_p3 = pnand %p1793_p10, %p1790_p6 }
  0x31   : > { %1798 = shalt.err (!%p1795_p3)
}
  0x32   : > { %s1799_s28 = scalar_lea.vmem %s2039_s6, 512  ;;  %p1807_p12 = scmp.lt.s32.totalorder %s2039_s6, %s2039_s6 }
  0x33   : > { %p1800_p5 = scmp.ne.s32.totalorder %s2039_s6, %s1799_s28  ;;  %p1808_p0 = scmp.lt.s32.totalorder %s1799_s28, %s1799_s28 }
  0x35   : > { %p1802_p7 = pnand %p1800_p5, %p1760_p13  ;;  %p1809_p2 = por %p1808_p0, %p1807_p12 }
  0x37   : > { %p1803_p9 = pneg %p1802_p7 }
  0x39   : > { %p1810_p1 = pnand %p1809_p2, %p1803_p9 }
  0x3b   : > { %1813 = shalt.err (!%p1810_p1)
}
  0x3c   : > { %1643 = dma.hbm_to_vmem [thread:$0]  (!%p2035_p11), %s2399_s3, 512, %s2039_s6, [#allocation6], %s1918_s15, %s1918_s15, %s1919_s16  }
  0x3d   : > { %s2094_s14 = sadd.s32 1, %s1914_s21   ;;  %s29_s29 = sadd.s32 1, %s1910_s20 }
  0x3e   : > { %s26_s17 = ssub.s32 %s1914_s21, %s2094_s14  ;;  %p36_p13 = scmp.ne.s32.totalorder %s1910_s20, %s1906_s19 }
  0x3f   : > { %p27_p6 = scmp.eq.s32.totalorder %s26_s17, 0  ;;  %p37_p10 = scmp.eq.s32.totalorder %s1914_s21, 0 }
  0x40   : > { %p2409_p3 = scmp.eq.s32.totalorder %s2005_s22, 1  ;;  %p1654_p7 = scmp.lt.s32.totalorder %s1914_s21, 2 }
  0x41   : > { %s2110_s27 = scalar_select %p27_p6, %s1910_s20, %s29_s29  }
  0x42   : > { %p2104_p5 = por %p2409_p3, %p36_p13  ;;  %p38_p9 = por %p37_p10, %p36_p13 }
  0x43   : > { %s210_s30 = sand.u32 1, %s1910_s20   ;;  %s1445_s6 = sshll.u32 %s1914_s21, 7 }
  0x44   : > { %s2410_s23 = scalar_select %p2104_p5, 1, 0 }
  0x45   : > { %s1444_s7 = sshll.u32 %s210_s30, 3  ;;  %s2117_s8 = scalar_lea.hbm %s2396_s0, %s1445_s6 }
  0x46   : > { %s214_s9 = scalar_lea.vmem [#allocation2], %s1444_s7  ;;  %p2121_p11 = pnand %p1654_p7, %p38_p9 }
  0x47   : > { %s221_s10 = sshll.u32 %s214_s9, 4  ;;  %s211_s28 = scalar_lea.sflag [#allocation3], %s210_s30  ;;  %s2119_s10 = int_to_ptr.vmem [resolvable:$true] %s221_s10 }
  0x48   : > { %s1814_s12 = scalar_lea.hbm %s2117_s8, 128  ;;  %p1816_p0 = pneg %p2121_p11 }
  0x49   : > { %p1815_p12 = scmp.ne.s32.totalorder %s2117_s8, %s1814_s12  ;;  %s1819_s17 = scalar_lea.hbm %s2396_s0, 256 }
  0x4a   : > { %p1820_p13 = scmp.lt.u32.totalorder %s2117_s8, %s2396_s0  ;;  %p1821_p6 = scmp.lt.u32.totalorder %s1819_s17, %s1814_s12 }
  0x4b   : > { %p1817_p2 = pnand %p1816_p0, %p1815_p12  ;;  %p1823_p3 = scmp.lt.u32.totalorder %s1814_s12, %s2117_s8 }
  0x4c   : > { %p1822_p10 = por %p1821_p6, %p1820_p13 }
  0x4d   : > { %p1818_p1 = pneg %p1817_p2 }
  0x4e   : > { %p1824_p7 = por %p1823_p3, %p1822_p10 }
  0x50   : > { %p1825_p9 = pnand %p1824_p7, %p1818_p1 }
  0x52   : > { %1828 = shalt.err (!%p1825_p9)
}
  0x53   : > { %s1829_s30 = scalar_lea.vmem %s2119_s10, 128  ;;  %s1920_s15 = smov [#allocation2]  }
  0x54   : > { %p1830_p12 = scmp.ne.s32.totalorder %s2119_s10, %s1829_s30  ;;  %s1834_s16 = sshll.u32 %s1920_s15, 4  ;;  %s1835_s16 = int_to_ptr.vmem [resolvable:$false] %s1834_s16 }
  0x55   : > { %s1836_s9 = scalar_lea.vmem %s1835_s16, 256  ;;  %p1837_p4 = scmp.lt.s32.totalorder %s2119_s10, %s1835_s16 }
  0x56   : > { %p1832_p2 = pnand %p1830_p12, %p1816_p0  ;;  %p1838_p13 = scmp.lt.s32.totalorder %s1836_s9, %s1829_s30 }
  0x58   : > { %p1833_p5 = pneg %p1832_p2  ;;  %p1839_p6 = por %p1838_p13, %p1837_p4 }
  0x5a   : > { %p1840_p10 = pnand %p1839_p6, %p1833_p5 }
  0x5c   : > { %1843 = shalt.err (!%p1840_p10)
}
  0x5d   : > { %1647 = dma.hbm_to_vmem [thread:$0]  (!%p2121_p11), %s2117_s8, 128, %s2119_s10, %s211_s28  }
  0x5e   : > { %236 = sbr.rel (%p2024_p8) target bundleno = 1650 (0x672), region = 40  ;;  %s2153_s12 = sand.u32 (!%p2024_p8), 1, %s1906_s19  }
  0x5f   : > { %s1447_s13 = sshll.u32 (!%p2024_p8), %s2153_s12, 3  ;;  %s239_s29 = scalar_lea.sflag (!%p2024_p8), [#allocation3], %s2153_s12 }
  0x60   : > { %s242_s17 = scalar_lea.vmem (!%p2024_p8), [#allocation2], %s1447_s13  ;;  %p2412_p4 = scmp.ne.s32.totalorder (!%p2024_p8), %s2405_s24, 0 }
  0x65   : > { %1889 = dma.done.wait (%p2412_p4), %s239_s29, 128  }
  0x66   : > { %1891 = vsyncadd (%p2412_p4), %s239_s29, 4294967168  ;;  %p2413_p5 = scmp.eq.s32.totalorder %s2005_s22, 0 }
  0x68   : > { %1893 = dma.done.wait (%p2413_p5), [#allocation6], 1024   ;;  %p2414_p8 = pmov %p2413_p5 }
  0x69   : > { %v1921_v0 = vmov 0.0   ;;  %vm1922_vm0 = vmmov 0   ;;  %v286_v1 = vld [vmem:[#allocation5] sm:$0xff]  ;;  %v287_v2 = vld [vmem:[#allocation5 + $0x8] sm:$0xff]  ;;  %v288_v3 = vld [vmem:[#allocation5 + $0x10] sm:$0xff]  ;;  %vm292_vm1 = vcmask 261120  }
  0x6a   : > { %1895 = vsyncadd (%p2414_p8), [#allocation6], 4294966272  ;;  %1513 = vmatprep.subr.bf16.mxu0 %v1921_v0  ;;  %1517 = vmatprep.mubr.msk.bf16.mxu0 %vm1922_vm0, %v1921_v0  ;;  %v290_v4 = vpack.c.bf16 %v287_v2, %v286_v1  ;;  %v289_v5 = vld [vmem:[#allocation5 + $0x18] sm:$0xff]  ;;  %s1923_s24 = smov 96   ;;  %s1924_s26 = smov 124   ;;  %vm349_vm2 = vcmask 31744  }
  0x6b   : > { %1521 = vmatprep.subr.bf16.mxu1 %v1921_v0  ;;  %1523 = vmatprep.mubr.msk.bf16.mxu1 %vm1922_vm0, %v1921_v0  ;;  %v291_v6 = vpack.c.bf16 %v289_v5, %v288_v3  ;;  %v284_v7 = vld [vmem:[%s242_s17] sm:$0xff]  ;;  %s1925_s8 = smov 92   ;;  %s1926_s10 = smov 88   ;;  %vm396_vm3 = vcmask 64512   ;;  %vm414_vm4 = vcmask 1043456   ;;  %vm1259_vm5 = vcmask 97280  }
  0x6c   : > { %1514 = vmatpush3.bf16.msra.mxu0 %v290_v4  ;;  %v285_v8 = vpack.c.bf16 %v284_v7, %v284_v7  ;;  %s1927_s11 = smov 120   ;;  %s1928_s28 = smov 84   ;;  %vm1261_vm6 = vcmask 130048   ;;  %vm1263_vm7 = vcmask 162816   ;;  %vm1265_vm8 = vcmask 195584  }
  0x6d   : > { %1515 = vmatprep.subr.bf16.mxu0 %v1921_v0  ;;  %s1929_s7 = smov 116   ;;  %s1930_s6 = smov 80   ;;  %vm1267_vm9 = vcmask 228352  }
  0x6e   : > { %s1931_s30 = smov 112   ;;  %s1932_s15 = smov 76  }
  0x6f   : > { %s1933_s16 = smov 108   ;;  %s1934_s9 = smov 72  }
  0x70   : > { %1516 = vmatpush3.bf16.msra.mxu0 %v291_v6  ;;  %s1935_s29 = smov 104   ;;  %s1936_s17 = smov 68  }
  0x71   : > { %1527 = vmatprep.subr.bf16.mxu0 %v1921_v0  ;;  %p280_p11 = scmp.lt.s32.totalorder %s2005_s22, 1  ;;  %p2415_p1 = scmp.ne.s32.totalorder %s2410_s23, 0 }
  0x73   : > { %1518 = vmatmul.mubr.msk.bf16.vlgmr.msra.gmra.mrb[0].mxu0 %vm292_vm1, %v285_v8 }
  0x74   : > { %1529 = vmatprep.mubr.msk.bf16.mxu0 %vm1922_vm0, %v1921_v0 }
 0x146   : > { %v330_v9 = vpop.f32.mrb[0].mxu0 }
 0x147   : > { %v336_v10 = vmul.f32 0.5, %v330_v9  ;;  %v2178_v11 = vpack.c.bf16 %v330_v9, %v330_v9  ;;  %v1519_v12 = vpop.f32.mrb[1].mxu0 }
 0x148   : > { %v333_v13 = vpop.f32.mrb[2].mxu0 }
 0x149   : > { %v337_v14 = vpack.c.bf16 %v336_v10, %v336_v10  ;;  %347 = vrot.lane.b32.xlu0 %v2178_v11, %s1923_s24  ;;  %v1520_v15 = vpop.f32.mrb[3].mxu0  ;;  %s1937_s24 = smov 100  }
 0x14b   : > { %459 = vrot.lane.b32.xlu1 %v337_v14, %s1924_s26  ;;  %s281_s26 = scalar_select %p280_p11, %s2005_s22, 1 }
 0x14d   : > { %461 = vrot.lane.b32.xlu0 %v2178_v11, %s1925_s8  ;;  %s1949_s8 = smov 16  }
 0x14f   : > { %571 = vrot.lane.b32.xlu1 %v2178_v11, %s1926_s10  ;;  %s1950_s10 = smov 20  }
 0x151   : > { %569 = vrot.lane.b32.xlu0 %v337_v14, %s1927_s11  ;;  %s282_s11 = scalar_lea.vmem %s2397_s1, %s281_s26  ;;  %s1948_s26 = smov 12  }
 0x152   : > { %v1452_v39 = vld [vmem:[%s282_s11] ss:$0 sm:$0xff]  ;;  %s1951_s11 = smov 24  }
 0x153   : > { %681 = vrot.lane.b32.xlu1 %v2178_v11, %s1928_s28  ;;  %s1938_s28 = smov 60  }
 0x155   : > { %679 = vrot.lane.b32.xlu0 %v337_v14, %s1929_s7  ;;  %s1939_s7 = smov 64  }
 0x157   : > { %791 = vrot.lane.b32.xlu1 %v2178_v11, %s1930_s6  ;;  %s1940_s6 = smov 56  }
 0x159   : > { %789 = vrot.lane.b32.xlu0 %v337_v14, %s1931_s30  ;;  %s1941_s30 = smov 52  }
 0x15b   : > { %901 = vrot.lane.b32.xlu1 %v2178_v11, %s1932_s15  ;;  %s1942_s15 = smov 44  }
 0x15d   : > { %899 = vrot.lane.b32.xlu0 %v337_v14, %s1933_s16  ;;  %s1943_s16 = smov 40  }
 0x15f   : > { %1011 = vrot.lane.b32.xlu1 %v2178_v11, %s1934_s9  ;;  %s1944_s9 = smov 36  }
 0x161   : > { %1009 = vrot.lane.b32.xlu0 %v337_v14, %s1935_s29  ;;  %s1945_s29 = smov 48  }
 0x163   : > { %1121 = vrot.lane.b32.xlu1 %v2178_v11, %s1936_s17  ;;  %s1946_s17 = smov 4  }
 0x165   : > { %1119 = vrot.lane.b32.xlu0 %v337_v14, %s1937_s24  ;;  %s1947_s24 = smov 8  }
 0x1bb   : > { %v348_v16 = vpop.permute.xlu0 %347 }
 0x1bc   : > { %v354_v17 = vsel %vm349_vm2, %v348_v16, 0 }
 0x1bd   : > { %1522 = vmatpush3.bf16.xpose.msra.mxu1 %v354_v17  ;;  %v460_v19 = vpop.permute.xlu1 %459 }
 0x1be   : > { %1533 = vmatprep.subr.bf16.mxu1 %v1921_v0 }
 0x1bf   : > { %v462_v18 = vpop.permute.xlu0 %461 }
 0x1c0   : > { %v467_v20 = vsel %vm349_vm2, %v462_v18, 0 }
 0x1c1   : > { %v572_v21 = vpop.permute.xlu1 %571 }
 0x1c2   : > { %v577_v22 = vsel %vm349_vm2, %v572_v21, 0 }
 0x1c3   : > { %v570_v24 = vpop.permute.xlu0 %569 }
 0x1c4   : > { %1524 = vmatmul.mubr.msk.bf16.vlgmr.msra.gmra.mrb[0].mxu1 %vm349_vm2, %v337_v14 }
 0x1c5   : > { %1534 = vmatpush3.bf16.xpose.msra.mxu1 %v467_v20  ;;  %1535 = vmatprep.mubr.msk.bf16.mxu1 %vm1922_vm0, %v1921_v0  ;;  %v682_v23 = vpop.permute.xlu1 %681 }
 0x1c6   : > { %1545 = vmatprep.subr.bf16.mxu1 %v1921_v0  ;;  %v687_v25 = vsel %vm349_vm2, %v682_v23, 0 }
 0x1c7   : > { %v680_v27 = vpop.permute.xlu0 %679 }
 0x1c9   : > { %v792_v26 = vpop.permute.xlu1 %791 }
 0x1ca   : > { %v797_v28 = vsel %vm349_vm2, %v792_v26, 0 }
 0x1cb   : > { %v790_v30 = vpop.permute.xlu0 %789 }
 0x1cc   : > { %1536 = vmatmul.mubr.msk.bf16.vlgmr.msra.gmra.mrb[4].mxu1 %vm349_vm2, %v460_v19 }
 0x1cd   : > { %1546 = vmatpush3.bf16.xpose.msra.mxu1 %v577_v22  ;;  %1547 = vmatprep.mubr.msk.bf16.mxu1 %vm1922_vm0, %v1921_v0  ;;  %v902_v29 = vpop.permute.xlu1 %901 }
 0x1ce   : > { %1557 = vmatprep.subr.bf16.mxu1 %v1921_v0  ;;  %v907_v31 = vsel %vm349_vm2, %v902_v29, 0 }
 0x1cf   : > { %v900_v33 = vpop.permute.xlu0 %899 }
 0x1d1   : > { %v1012_v32 = vpop.permute.xlu1 %1011 }
 0x1d2   : > { %v1017_v34 = vsel %vm349_vm2, %v1012_v32, 0 }
 0x1d3   : > { %v1010_v36 = vpop.permute.xlu0 %1009 }
 0x1d4   : > { %1548 = vmatmul.mubr.msk.bf16.vlgmr.msra.gmra.mrb[8].mxu1 %vm349_vm2, %v570_v24 }
 0x1d5   : > { %1558 = vmatpush3.bf16.xpose.msra.mxu1 %v687_v25  ;;  %1559 = vmatprep.mubr.msk.bf16.mxu1 %vm1922_vm0, %v1921_v0  ;;  %v1122_v35 = vpop.permute.xlu1 %1121 }
 0x1d6   : > { %1569 = vmatprep.subr.bf16.mxu1 %v1921_v0  ;;  %v1127_v37 = vsel %vm349_vm2, %v1122_v35, 0 }
 0x1d7   : > { %v1120_v38 = vpop.permute.xlu0 %1119 }
 0x1dc   : > { %1560 = vmatmul.mubr.msk.bf16.vlgmr.msra.gmra.mrb[12].mxu1 %vm349_vm2, %v680_v27 }
 0x1dd   : > { %1570 = vmatpush3.bf16.xpose.msra.mxu1 %v797_v28  ;;  %1571 = vmatprep.mubr.msk.bf16.mxu1 %vm1922_vm0, %v1921_v0 }
 0x1de   : > { %1581 = vmatprep.subr.bf16.mxu1 %v1921_v0 }
 0x1e4   : > { %1572 = vmatmul.mubr.msk.bf16.vlgmr.msra.gmra.mrb[16].mxu1 %vm349_vm2, %v790_v30 }
 0x1e5   : > { %1582 = vmatpush3.bf16.xpose.msra.mxu1 %v907_v31  ;;  %1583 = vmatprep.mubr.msk.bf16.mxu1 %vm1922_vm0, %v1921_v0 }
 0x1e6   : > { %1593 = vmatprep.subr.bf16.mxu1 %v1921_v0 }
 0x1ec   : > { %1584 = vmatmul.mubr.msk.bf16.vlgmr.msra.gmra.mrb[20].mxu1 %vm349_vm2, %v900_v33 }
 0x1ed   : > { %1594 = vmatpush3.bf16.xpose.msra.mxu1 %v1017_v34  ;;  %1595 = vmatprep.mubr.msk.bf16.mxu1 %vm1922_vm0, %v1921_v0 }
 0x1ee   : > { %1605 = vmatprep.subr.bf16.mxu1 %v1921_v0 }
 0x1f4   : > { %1596 = vmatmul.mubr.msk.bf16.vlgmr.msra.gmra.mrb[24].mxu1 %vm349_vm2, %v1010_v36 }
 0x1f5   : > { %1606 = vmatpush3.bf16.xpose.msra.mxu1 %v1127_v37  ;;  %1607 = vmatprep.mubr.msk.bf16.mxu1 %vm1922_vm0, %v1921_v0 }
 0x1f6   : > { %1617 = vmatprep.subr.bf16.mxu1 %v1921_v0 }
 0x1fc   : > { %1608 = vmatmul.mubr.msk.bf16.vlgmr.msra.gmra.mrb[28].mxu1 %vm349_vm2, %v1120_v38 }
 0x1fd   : > { %1621 = vmatprep.mubr.msk.bf16.mxu1 %vm1922_vm0, %v1921_v0 }
 0x297   : > { %v390_v40 = vpop.f32.mrb[0].mxu1 }
 0x298   : > { %v2233_v41 = vadd.f32 %v1452_v39, %v390_v40  ;;  %v1525_v42 = vpop.f32.mrb[1].mxu1 }
 0x299   : > { %v393_v43 = vpop.f32.mrb[2].mxu1 }
 0x29a   : > { %v1526_v44 = vpop.f32.mrb[3].mxu1  ;;  %v397_v45 = vsel %vm396_vm3, %v2233_v41, -inf }
 0x29b   : > { %398 = vmax.xlane.f32.xlu1 %v397_v45 }
 0x29f   : > { %v503_v46 = vpop.f32.mrb[4].mxu1 }
 0x2a0   : > { %v504_v47 = vadd.f32 %v1452_v39, %v503_v46  ;;  %v1537_v48 = vpop.f32.mrb[5].mxu1 }
 0x2a1   : > { %v506_v49 = vpop.f32.mrb[6].mxu1 }
 0x2a2   : > { %v1538_v50 = vpop.f32.mrb[7].mxu1  ;;  %v509_v51 = vsel %vm396_vm3, %v504_v47, -inf }
 0x2a3   : > { %510 = vmax.xlane.f32.xlu0 %v509_v51 }
 0x2a7   : > { %v613_v52 = vpop.f32.mrb[8].mxu1 }
 0x2a8   : > { %v614_v53 = vadd.f32 %v1452_v39, %v613_v52  ;;  %v1549_v54 = vpop.f32.mrb[9].mxu1 }
 0x2a9   : > { %v616_v55 = vpop.f32.mrb[10].mxu1 }
 0x2aa   : > { %v1550_v56 = vpop.f32.mrb[11].mxu1  ;;  %v619_v57 = vsel %vm396_vm3, %v614_v53, -inf }
 0x2ab   : > { %620 = vmax.xlane.f32.xlu0 %v619_v57 }
 0x2af   : > { %v723_v58 = vpop.f32.mrb[12].mxu1 }
 0x2b0   : > { %v724_v59 = vadd.f32 %v1452_v39, %v723_v58  ;;  %v1561_v60 = vpop.f32.mrb[13].mxu1 }
 0x2b1   : > { %v726_v61 = vpop.f32.mrb[14].mxu1 }
 0x2b2   : > { %v1562_v62 = vpop.f32.mrb[15].mxu1  ;;  %v729_v63 = vsel %vm396_vm3, %v724_v59, -inf }
 0x2b3   : > { %730 = vmax.xlane.f32.xlu1 %v729_v63 }
 0x2b7   : > { %v833_v1 = vpop.f32.mrb[16].mxu1 }
 0x2b8   : > { %v834_v2 = vadd.f32 %v1452_v39, %v833_v1  ;;  %v1573_v3 = vpop.f32.mrb[17].mxu1 }
 0x2b9   : > { %v836_v4 = vpop.f32.mrb[18].mxu1 }
 0x2ba   : > { %v1574_v5 = vpop.f32.mrb[19].mxu1  ;;  %v839_v6 = vsel %vm396_vm3, %v834_v2, -inf }
 0x2bb   : > { %840 = vmax.xlane.f32.xlu0 %v839_v6 }
 0x2bf   : > { %v943_v7 = vpop.f32.mrb[20].mxu1 }
 0x2c0   : > { %v2241_v8 = vadd.f32 %v1452_v39, %v943_v7  ;;  %v1585_v9 = vpop.f32.mrb[21].mxu1 }
 0x2c1   : > { %v946_v10 = vpop.f32.mrb[22].mxu1 }
 0x2c2   : > { %v1586_v12 = vpop.f32.mrb[23].mxu1  ;;  %v949_v13 = vsel %vm396_vm3, %v2241_v8, -inf }
 0x2c3   : > { %950 = vmax.xlane.f32.xlu1 %v949_v13 }
 0x2c7   : > { %v1053_v14 = vpop.f32.mrb[24].mxu1 }
 0x2c8   : > { %v1054_v15 = vadd.f32 %v1452_v39, %v1053_v14  ;;  %v1597_v16 = vpop.f32.mrb[25].mxu1 }
 0x2c9   : > { %v1056_v17 = vpop.f32.mrb[26].mxu1 }
 0x2ca   : > { %v1598_v18 = vpop.f32.mrb[27].mxu1  ;;  %v1059_v19 = vsel %vm396_vm3, %v1054_v15, -inf }
 0x2cb   : > { %1060 = vmax.xlane.f32.xlu0 %v1059_v19 }
 0x2cf   : > { %v1163_v20 = vpop.f32.mrb[28].mxu1 }
 0x2d0   : > { %v2246_v21 = vadd.f32 %v1452_v39, %v1163_v20  ;;  %v1609_v22 = vpop.f32.mrb[29].mxu1 }
 0x2d1   : > { %v1166_v23 = vpop.f32.mrb[30].mxu1 }
 0x2d2   : > { %v1610_v24 = vpop.f32.mrb[31].mxu1  ;;  %v1169_v25 = vsel %vm396_vm3, %v2246_v21, -inf }
 0x2d4   : > { %521 = vrot.lane.b32.xlu1 %v2178_v11, %s1938_s28  ;;  %s1952_s28 = smov 28  }
 0x2e1   : > { %409 = vrot.lane.b32.xlu0 %v2178_v11, %s1939_s7 }
 0x2f8   : > { %1170 = vmax.xlane.f32.xlu1 %v1169_v25 }
 0x309   : > { %631 = vrot.lane.b32.xlu1 %v2178_v11, %s1940_s6 }
 0x328   : > { %v399_v26 = vpop.xlane.xlu1 %398 }
 0x329   : > { %v400_v27 = vsub.f32 %v2233_v41, %v399_v26 }
 0x32b   : > { %v401_v28 = vmul.f32 1.442695, %v400_v27 }
 0x32d   : > { %1726 = vpow2.f32 %v401_v28 }
 0x330   : > { %v511_v29 = vpop.xlane.xlu0 %510 }
 0x331   : > { %v512_v30 = vsub.f32 %v504_v47, %v511_v29 }
 0x333   : > { %v513_v31 = vmul.f32 1.442695, %v512_v30 }
 0x335   : > { %1728 = vpow2.f32 %v513_v31 }
 0x337   : > { %v2254_v32 = vpop.eup %1726 }
 0x338   : > { %v621_v33 = vpop.xlane.xlu0 %620  ;;  %v403_v34 = vsel %vm396_vm3, %v2254_v32, 0.0 }
 0x339   : > { %v622_v35 = vsub.f32 %v614_v53, %v621_v33  ;;  %404 = vadd.xlane.f32.xlu0 %v403_v34 }
 0x33b   : > { %v623_v36 = vmul.f32 1.442695, %v622_v35 }
 0x33d   : > { %1730 = vpow2.f32 %v623_v36 }
 0x33f   : > { %v2258_v37 = vpop.eup %1728 }
 0x340   : > { %v731_v38 = vpop.xlane.xlu1 %730  ;;  %v515_v39 = vsel %vm396_vm3, %v2258_v37, 0.0 }
 0x341   : > { %v732_v40 = vsub.f32 %v724_v59, %v731_v38  ;;  %516 = vadd.xlane.f32.xlu1 %v515_v39 }
 0x343   : > { %v733_v41 = vmul.f32 1.442695, %v732_v40 }
 0x345   : > { %1732 = vpow2.f32 %v733_v41 }
 0x347   : > { %v2262_v42 = vpop.eup %1730 }
 0x348   : > { %v841_v43 = vpop.xlane.xlu0 %840  ;;  %v625_v44 = vsel %vm396_vm3, %v2262_v42, 0.0 }
 0x349   : > { %v842_v45 = vsub.f32 %v834_v2, %v841_v43  ;;  %626 = vadd.xlane.f32.xlu0 %v625_v44 }
 0x34b   : > { %v843_v46 = vmul.f32 1.442695, %v842_v45 }
 0x34d   : > { %1734 = vpow2.f32 %v843_v46 }
 0x34f   : > { %v2266_v47 = vpop.eup %1732 }
 0x350   : > { %v735_v48 = vsel %vm396_vm3, %v2266_v47, 0.0  ;;  %v951_v56 = vpop.xlane.xlu1 %950 }
 0x351   : > { %736 = vadd.xlane.f32.xlu1 %v735_v48  ;;  %v952_v58 = vsub.f32 %v2241_v8, %v951_v56 }
 0x353   : > { %v953_v60 = vmul.f32 1.442695, %v952_v58 }
 0x354   : > { %v522_v63 = vpop.permute.xlu1 %521 }
 0x355   : > { %v527_v13 = vsel %vm414_vm4, %v522_v63, 0 }
 0x357   : > { %v2270_v49 = vpop.eup %1734 }
 0x358   : > { %v1061_v50 = vpop.xlane.xlu0 %1060  ;;  %v845_v51 = vsel %vm396_vm3, %v2270_v49, 0.0 }
 0x359   : > { %v1062_v52 = vsub.f32 %v1054_v15, %v1061_v50  ;;  %846 = vadd.xlane.f32.xlu1 %v845_v51 }
 0x35b   : > { %v1063_v53 = vmul.f32 1.442695, %v1062_v52 }
 0x35c   : > { %v410_v54 = vpop.permute.xlu0 %409 }
 0x35d   : > { %1736 = vpow2.f32 %v1063_v53  ;;  %v416_v55 = vsel %vm414_vm4, %v410_v54, 0 }
 0x35e   : > { %1528 = vmatpush3.bf16.msra.mxu0 %v416_v55  ;;  %1738 = vpow2.f32 %v953_v60 }
 0x35f   : > { %741 = vrot.lane.b32.xlu0 %v2178_v11, %s1941_s30  ;;  %1539 = vmatprep.subr.bf16.mxu0 %v1921_v0  ;;  %s1472_s30 = sshll.u32 %s2005_s22, 7  ;;  %s1328_s22 = scalar_lea.sflag [#allocation4], %s2153_s12 }
 0x367   : > { %v2277_v57 = vpop.eup %1736 }
 0x368   : > { %v1065_v59 = vsel %vm396_vm3, %v2277_v57, 0.0  ;;  %v2282_v61 = vpop.eup %1738 }
 0x369   : > { %1066 = vadd.xlane.f32.xlu1 %v1065_v59  ;;  %v955_v62 = vsel %vm396_vm3, %v2282_v61, 0.0 }
 0x37e   : > { %956 = vadd.xlane.f32.xlu0 %v955_v62 }
 0x385   : > { %v1171_v1 = vpop.xlane.xlu1 %1170 }
 0x386   : > { %v1172_v2 = vsub.f32 %v2246_v21, %v1171_v1 }
 0x388   : > { %v1173_v3 = vmul.f32 1.442695, %v1172_v2 }
 0x389   : > { %v632_v7 = vpop.permute.xlu1 %631 }
 0x38a   : > { %1740 = vpow2.f32 %v1173_v3  ;;  %v637_v17 = vsel %vm414_vm4, %v632_v7, 0 }
 0x394   : > { %v2287_v4 = vpop.eup %1740  ;;  %961 = vrot.lane.b32.xlu0 %v2178_v11, %s1942_s15  ;;  %s279_s15 = scalar_lea.vmem [#allocation8], %s1447_s13 }
 0x395   : > { %v1175_v5 = vsel %vm396_vm3, %v2287_v4, 0.0 }
 0x396   : > { %1176 = vadd.xlane.f32.xlu1 %v1175_v5 }
 0x398   : > { %1071 = vrot.lane.b32.xlu0 %v2178_v11, %s1943_s16  ;;  %s1341_s16 = sshll.u32 %s279_s15, 4  ;;  %s2353_s16 = int_to_ptr.vmem [resolvable:$true] %s1341_s16 }
 0x399   : > { %s1844_s13 = scalar_lea.vmem %s2353_s16, 128 }
 0x39a   : > { %p1845_p0 = scmp.ne.s32.totalorder %s2353_s16, %s1844_s13 }
 0x39c   : > { %1181 = vrot.lane.b32.xlu0 %v2178_v11, %s1944_s9  ;;  %p1846_p3 = pnand %p1845_p0, %p2415_p1 }
 0x39e   : > { %p1847_p7 = pneg %p1846_p3 }
 0x3a7   : > { %851 = vrot.lane.b32.xlu1 %v2178_v11, %s1945_s29 }
 0x3c6   : > { %v405_v6 = vpop.xlane.xlu0 %404 }
 0x3c7   : > { %1742 = vrcp.f32 %v405_v6 }
 0x3ce   : > { %v517_v8 = vpop.xlane.xlu1 %516 }
 0x3cf   : > { %1744 = vrcp.f32 %v517_v8  ;;  %v1270_v8 = vld [vmem:[#allocation7] sm:$0xff] }
 0x3d1   : > { %v1743_v9 = vpop.eup %1742 }
 0x3d2   : > { %v407_v10 = vmul.f32 %v1743_v9, %v2254_v32  ;;  %v1271_v9 = vld [vmem:[#allocation7 + $0x8] sm:$0xff] }
 0x3d4   : > { %v408_v12 = vpack.c.bf16 %v407_v10, %v407_v10  ;;  %v1274_v10 = vpack.c.bf16 %v1271_v9, %v1270_v8 }
 0x3d6   : > { %1530 = vmatmul.mubr.msk.bf16.vlgmr.msra.gmra.mrb[4].mxu0 %vm396_vm3, %v408_v12  ;;  %v627_v14 = vpop.xlane.xlu0 %626  ;;  %1618 = vmatpush3.bf16.msra.mxu1 %v1274_v10 }
 0x3d7   : > { %1540 = vmatpush3.bf16.msra.mxu0 %v527_v13  ;;  %1746 = vrcp.f32 %v627_v14  ;;  %1541 = vmatprep.mubr.msk.bf16.mxu0 %vm1922_vm0, %v1921_v0 }
 0x3d8   : > { %1551 = vmatprep.subr.bf16.mxu0 %v1921_v0  ;;  %1619 = vmatprep.subr.bf16.mxu1 %v1921_v0 }
 0x3d9   : > { %v1745_v11 = vpop.eup %1744 }
 0x3da   : > { %v519_v15 = vmul.f32 %v1745_v11, %v2258_v37  ;;  %v742_v21 = vpop.permute.xlu0 %741  ;;  %v1272_v11 = vld [vmem:[#allocation7 + $0x10] sm:$0xff] }
 0x3db   : > { %v747_v23 = vsel %vm414_vm4, %v742_v21, 0 }
 0x3dc   : > { %v520_v16 = vpack.c.bf16 %v519_v15, %v519_v15  ;;  %v1273_v15 = vld [vmem:[#allocation7 + $0x18] sm:$0xff] }
 0x3de   : > { %1542 = vmatmul.mubr.msk.bf16.vlgmr.msra.gmra.mrb[8].mxu0 %vm396_vm3, %v520_v16  ;;  %v737_v18 = vpop.xlane.xlu1 %736 }
 0x3df   : > { %1552 = vmatpush3.bf16.msra.mxu0 %v637_v17  ;;  %1748 = vrcp.f32 %v737_v18  ;;  %1553 = vmatprep.mubr.msk.bf16.mxu0 %vm1922_vm0, %v1921_v0  ;;  %v1275_v17 = vpack.c.bf16 %v1273_v15, %v1272_v11 }
 0x3e0   : > { %1563 = vmatprep.subr.bf16.mxu0 %v1921_v0 }
 0x3e1   : > { %v1747_v19 = vpop.eup %1746  ;;  %1620 = vmatpush3.bf16.msra.mxu1 %v1275_v17 }
 0x3e2   : > { %v629_v20 = vmul.f32 %v1747_v19, %v2262_v42 }
 0x3e4   : > { %v630_v22 = vpack.c.bf16 %v629_v20, %v629_v20 }
 0x3e6   : > { %1554 = vmatmul.mubr.msk.bf16.vlgmr.msra.gmra.mrb[12].mxu0 %vm396_vm3, %v630_v22  ;;  %v847_v27 = vpop.xlane.xlu1 %846 }
 0x3e7   : > { %1564 = vmatpush3.bf16.msra.mxu0 %v747_v23  ;;  %1565 = vmatprep.mubr.msk.bf16.mxu0 %vm1922_vm0, %v1921_v0  ;;  %1750 = vrcp.f32 %v847_v27 }
 0x3e8   : > { %1575 = vmatprep.subr.bf16.mxu0 %v1921_v0 }
 0x3e9   : > { %v1749_v24 = vpop.eup %1748 }
 0x3ea   : > { %v739_v25 = vmul.f32 %v1749_v24, %v2266_v47 }
 0x3ec   : > { %v740_v26 = vpack.c.bf16 %v739_v25, %v739_v25 }
 0x3ee   : > { %1566 = vmatmul.mubr.msk.bf16.vlgmr.msra.gmra.mrb[16].mxu0 %vm396_vm3, %v740_v26 }
 0x3ef   : > { %1577 = vmatprep.mubr.msk.bf16.mxu0 %vm1922_vm0, %v1921_v0 }
 0x3f1   : > { %v1751_v30 = vpop.eup %1750 }
 0x3f2   : > { %v849_v32 = vmul.f32 %v1751_v30, %v2270_v49 }
 0x3f4   : > { %v850_v36 = vpack.c.bf16 %v849_v32, %v849_v32 }
 0x3f6   : > { %v1067_v29 = vpop.xlane.xlu1 %1066 }
 0x40b   : > { %v957_v28 = vpop.xlane.xlu0 %956 }
 0x40c   : > { %1752 = vrcp.f32 %v957_v28 }
 0x40d   : > { %1754 = vrcp.f32 %v1067_v29 }
 0x40f   : > { %v962_v35 = vpop.permute.xlu0 %961 }
 0x410   : > { %v967_v38 = vsel %vm414_vm4, %v962_v35, 0 }
 0x413   : > { %v1072_v40 = vpop.permute.xlu0 %1071 }
 0x414   : > { %v1077_v43 = vsel %vm414_vm4, %v1072_v40, 0  ;;  %v1469_v40 = vld [vmem:[%s2400_s4] ss:$0 sm:$0xff] }
 0x416   : > { %v1753_v37 = vpop.eup %1752 }
 0x417   : > { %v959_v39 = vmul.f32 %v1753_v37, %v2282_v61  ;;  %v1755_v42 = vpop.eup %1754  ;;  %v1182_v45 = vpop.permute.xlu0 %1181 }
 0x418   : > { %v1069_v44 = vmul.f32 %v1755_v42, %v2277_v57  ;;  %v1187_v48 = vsel %vm414_vm4, %v1182_v45, 0 }
 0x419   : > { %v960_v41 = vpack.c.bf16 %v959_v39, %v959_v39 }
 0x41a   : > { %v1070_v46 = vpack.c.bf16 %v1069_v44, %v1069_v44 }
 0x423   : > { %v1177_v31 = vpop.xlane.xlu1 %1176 }
 0x424   : > { %1756 = vrcp.f32 %v1177_v31 }
 0x427   : > { %v852_v33 = vpop.permute.xlu1 %851 }
 0x428   : > { %v857_v34 = vsel %vm414_vm4, %v852_v33, 0 }
 0x429   : > { %1576 = vmatpush3.bf16.msra.mxu0 %v857_v34 }
 0x42a   : > { %1587 = vmatprep.subr.bf16.mxu0 %v1921_v0 }
 0x42c   : > { %1578 = vmatmul.mubr.msk.bf16.vlgmr.msra.gmra.mrb[20].mxu0 %vm396_vm3, %v850_v36 }
 0x42d   : > { %1588 = vmatpush3.bf16.msra.mxu0 %v967_v38  ;;  %1589 = vmatprep.mubr.msk.bf16.mxu0 %vm1922_vm0, %v1921_v0 }
 0x42e   : > { %1599 = vmatprep.subr.bf16.mxu0 %v1921_v0  ;;  %v1757_v47 = vpop.eup %1756 }
 0x42f   : > { %v1179_v49 = vmul.f32 %v1757_v47, %v2287_v4 }
 0x431   : > { %v1180_v50 = vpack.c.bf16 %v1179_v49, %v1179_v49 }
 0x434   : > { %1590 = vmatmul.mubr.msk.bf16.vlgmr.msra.gmra.mrb[24].mxu0 %vm396_vm3, %v960_v41 }
 0x435   : > { %1600 = vmatpush3.bf16.msra.mxu0 %v1077_v43  ;;  %1601 = vmatprep.mubr.msk.bf16.mxu0 %vm1922_vm0, %v1921_v0 }
 0x436   : > { %1611 = vmatprep.subr.bf16.mxu0 %v1921_v0 }
 0x43c   : > { %1602 = vmatmul.mubr.msk.bf16.vlgmr.msra.gmra.mrb[28].mxu0 %vm396_vm3, %v1070_v46 }
 0x43d   : > { %1612 = vmatpush3.bf16.msra.mxu0 %v1187_v48  ;;  %1613 = vmatprep.mubr.msk.bf16.mxu0 %vm1922_vm0, %v1921_v0 }
 0x444   : > { %1614 = vmatmul.mubr.msk.bf16.vlgmr.msra.gmra.mrb[32].mxu0 %vm396_vm3, %v1180_v50 }
 0x4a9   : > { %v452_v51 = vpop.f32.mrb[4].mxu0 }
 0x4aa   : > { %v1531_v52 = vpop.f32.mrb[5].mxu0 }
 0x4ab   : > { %v455_v53 = vpop.f32.mrb[6].mxu0 }
 0x4ac   : > { %v1532_v54 = vpop.f32.mrb[7].mxu0 }
 0x4b1   : > { %v563_v55 = vpop.f32.mrb[8].mxu0 }
 0x4b2   : > { %1230 = vrot.lane.b32.xlu1 %v563_v55, %s1946_s17  ;;  %v1543_v56 = vpop.f32.mrb[9].mxu0  ;;  %s2351_s17 = scalar_lea.hbm %s2401_s5, %s1472_s30 }
 0x4b3   : > { %v566_v57 = vpop.f32.mrb[10].mxu0 }
 0x4b4   : > { %v1544_v58 = vpop.f32.mrb[11].mxu0 }
 0x4b9   : > { %v673_v59 = vpop.f32.mrb[12].mxu0 }
 0x4ba   : > { %1234 = vrot.lane.b32.xlu0 %v673_v59, %s1947_s24  ;;  %v1555_v60 = vpop.f32.mrb[13].mxu0  ;;  %s1953_s24 = smov [#allocation8]  }
 0x4bb   : > { %v676_v61 = vpop.f32.mrb[14].mxu0 }
 0x4bc   : > { %v1556_v62 = vpop.f32.mrb[15].mxu0 }
 0x4c1   : > { %v783_v63 = vpop.f32.mrb[16].mxu0 }
 0x4c2   : > { %1238 = vrot.lane.b32.xlu1 %v783_v63, %s1948_s26  ;;  %v1567_v1 = vpop.f32.mrb[17].mxu0  ;;  %s1848_s26 = sshll.u32 %s1953_s24, 4  ;;  %s1849_s26 = int_to_ptr.vmem [resolvable:$false] %s1848_s26 }
 0x4c3   : > { %v786_v2 = vpop.f32.mrb[18].mxu0  ;;  %p1851_p9 = scmp.lt.s32.totalorder %s2353_s16, %s1849_s26 }
 0x4c4   : > { %v1568_v3 = vpop.f32.mrb[19].mxu0 }
 0x4ff   : > { %v893_v4 = vpop.f32.mrb[20].mxu0 }
 0x500   : > { %1242 = vrot.lane.b32.xlu0 %v893_v4, %s1949_s8  ;;  %v1579_v5 = vpop.f32.mrb[21].mxu0  ;;  %s1850_s8 = scalar_lea.vmem %s1849_s26, 256 }
 0x501   : > { %v896_v6 = vpop.f32.mrb[22].mxu0  ;;  %p1852_p12 = scmp.lt.s32.totalorder %s1850_s8, %s1844_s13 }
 0x502   : > { %v1580_v7 = vpop.f32.mrb[23].mxu0 }
 0x503   : > { %p1853_p2 = por %p1852_p12, %p1851_p9 }
 0x505   : > { %p1854_p13 = pnand %p1853_p2, %p1847_p7 }
 0x507   : > { %v1003_v12 = vpop.f32.mrb[24].mxu0 }
 0x508   : > { %1246 = vrot.lane.b32.xlu1 %v1003_v12, %s1950_s10  ;;  %v1591_v13 = vpop.f32.mrb[25].mxu0 }
 0x509   : > { %v1006_v14 = vpop.f32.mrb[26].mxu0 }
 0x50a   : > { %v1592_v16 = vpop.f32.mrb[27].mxu0 }
 0x50f   : > { %v1113_v18 = vpop.f32.mrb[28].mxu0 }
 0x510   : > { %1250 = vrot.lane.b32.xlu0 %v1113_v18, %s1951_s11  ;;  %v1603_v19 = vpop.f32.mrb[29].mxu0 }
 0x511   : > { %v1116_v20 = vpop.f32.mrb[30].mxu0 }
 0x512   : > { %v1604_v21 = vpop.f32.mrb[31].mxu0 }
 0x517   : > { %v1223_v22 = vpop.f32.mrb[32].mxu0 }
 0x518   : > { %1254 = vrot.lane.b32.xlu1 %v1223_v22, %s1952_s28  ;;  %v1615_v23 = vpop.f32.mrb[33].mxu0 }
 0x519   : > { %v1226_v0 = vpop.f32.mrb[34].mxu0 }
 0x51a   : > { %v1616_v24 = vpop.f32.mrb[35].mxu0 }
 0x524   : > { %v1231_v25 = vpop.permute.xlu1 %1230 }
 0x525   : > { %v1257_v29 = vsel %vm349_vm2, %v452_v51, %v1231_v25 }
 0x52c   : > { %v1235_v26 = vpop.permute.xlu0 %1234 }
 0x52d   : > { %v1258_v30 = vsel %vm396_vm3, %v1257_v29, %v1235_v26 }
 0x534   : > { %v1239_v27 = vpop.permute.xlu1 %1238 }
 0x535   : > { %v1260_v32 = vsel %vm1259_vm5, %v1258_v30, %v1239_v27 }
 0x572   : > { %v1243_v28 = vpop.permute.xlu0 %1242 }
 0x573   : > { %v1262_v34 = vsel %vm1261_vm6, %v1260_v32, %v1243_v28 }
 0x57a   : > { %v1247_v31 = vpop.permute.xlu1 %1246 }
 0x57b   : > { %v1264_v35 = vsel %vm1263_vm7, %v1262_v34, %v1247_v31 }
 0x582   : > { %v1251_v33 = vpop.permute.xlu0 %1250 }
 0x583   : > { %v1266_v36 = vsel %vm1265_vm8, %v1264_v35, %v1251_v33 }
 0x58a   : > { %v1255_v37 = vpop.permute.xlu1 %1254 }
 0x58b   : > { %v1268_v38 = vsel %vm1267_vm9, %v1266_v36, %v1255_v37 }
 0x58c   : > { %v1269_v39 = vpack.c.bf16 %v1268_v38, %v1268_v38 }
 0x58e   : > { %1622 = vmatmul.mubr.msk.bf16.vlgmr.msra.gmra.mrb[32].mxu1 %vm292_vm1, %v1269_v39 }
 0x661   : > { %v1320_v41 = vpop.f32.mrb[32].mxu1 }
 0x662   : > { %v1321_v42 = vadd.f32 %v1469_v40, %v1320_v41  ;;  %v1623_v43 = vpop.f32.mrb[33].mxu1 }
 0x663   : > { %v1323_v44 = vpop.f32.mrb[34].mxu1 }
 0x664   : > { %v1624_v45 = vpop.f32.mrb[35].mxu1  ;;  %1326 = vst.msk [vmem:[%s279_s15] sm:$0xff] %vm292_vm1, %v1321_v42 }
 0x665   : > { %1857 = shalt.err (!%p1854_p13)
}
 0x666   : > { %s1858_s12 = scalar_lea.hbm %s2351_s17, 128  ;;  %s1862_s28 = scalar_lea.hbm %s2401_s5, 256 }
 0x667   : > { %p1859_p6 = scmp.ne.s32.totalorder %s2351_s17, %s1858_s12  ;;  %p1863_p5 = scmp.lt.u32.totalorder %s2351_s17, %s2401_s5 }
 0x668   : > { %p1864_p8 = scmp.lt.u32.totalorder %s1862_s28, %s1858_s12  ;;  %p1866_p0 = scmp.lt.u32.totalorder %s1858_s12, %s2351_s17 }
 0x669   : > { %p1860_p10 = pnand %p1859_p6, %p2415_p1 }
 0x66a   : > { %p1865_p11 = por %p1864_p8, %p1863_p5 }
 0x66b   : > { %p1861_p4 = pneg %p1860_p10 }
 0x66c   : > { %p1867_p3 = por %p1866_p0, %p1865_p11 }
 0x66e   : > { %p1868_p7 = pnand %p1867_p3, %p1861_p4 }
 0x670   : > { %1871 = shalt.err (!%p1868_p7)
}
 0x671   : > { %1635 = dma.vmem_to_hbm [thread:$0]  (%p2415_p1), %s2353_s16, 128, %s2351_s17, %s1328_s22  }
 0x672 PF: > { %s1353_s30 = sand.u32 1, %s1902_s18   ;;  %p2416_p9 = scmp.ne.s32.totalorder %s2406_s25, 0 }
 0x673   : > { %p2417_p12 = scmp.ge.s32.totalorder %s1914_s21, 2  ;;  %s1354_s15 = scalar_lea.sflag [#allocation4], %s1353_s30 }
 0x675   : > { %p1649_p2 = pnand %p2417_p12, %p2416_p9 }
 0x677   : > { %1897 = dma.done.wait (!%p1649_p2), %s1354_s15, 128  }
 0x678   : > { %1899 = vsyncadd (!%p1649_p2), %s1354_s15, 4294967168  ;;  %p19_p13 = scmp.ge.s32.totalorder %s2094_s14, 4   ;;  %s2418_s18 = smov %s1906_s19 }
 0x679   : > { %s2419_s19 = smov %s1910_s20  ;;  %s2420_s20 = smov %s2110_s27 }
 0x67a   : > { %s2421_s21 = smov %s2094_s14  ;;  %21 = sbr.rel (!%p19_p13) target bundleno = 6 (0x6), region = 96 }
 0x681   :  { %1359 = vsyncpa [#allocation3], 1 }
 0x682   :  { %1361 = vsyncpa [#allocation3 + $0x1], 1 }
 0x683   :  { %1362 = vsyncpa [#allocation6], 1 }
 0x684   :  { %1363 = vsyncpa [#allocation4], 1 }
 0x685   :  { %1365 = vsyncpa [#allocation4 + $0x1], 1 }

</bundles_post_ra>
